<compile_context>
chip_gen: v5e
topology: v5e:2x2
jax: 0.10.0
libtpu: 0.0.40
codegen_flags: <defaults>
</compile_context>

<pallas_src>
import jax
import jax.numpy as jnp
from jax import lax
from jax.experimental import pallas as pl
from jax.experimental.pallas import tpu as pltpu


def head_kernel(x_ref, wqkv_ref, o_ref):
    # x_ref: [B, T, C]   wqkv_ref: [C, 3*hs] (Q columns pre-scaled by C**-0.5)
    # o_ref: [B, T, hs]
    B, T, C = x_ref.shape
    hs = o_ref.shape[-1]

    # Single fused QKV projection on the MXU: (B*T, C) @ (C, 3*hs), f32 acc.
    x2 = x_ref[...].reshape(B * T, C)
    qkv = jnp.dot(x2, wqkv_ref[...], preferred_element_type=jnp.float32)
    qkv = qkv.reshape(B, T, 3 * hs)
    q = qkv[..., 0 * hs:1 * hs]          # already carries the C**-0.5 scale
    k = qkv[..., 1 * hs:2 * hs]
    v = qkv[..., 2 * hs:3 * hs]

    # Batched attention scores; contract on the head dim (no explicit k.T).
    s = jnp.einsum('bqd,bkd->bqk', q, k,
                   preferred_element_type=jnp.float32)       # (B, T, T)

    # Causal mask == tril[:T, :T], generated in-kernel (no mask DMA).
    row = lax.broadcasted_iota(jnp.int32, (T, T), 0)
    col = lax.broadcasted_iota(jnp.int32, (T, T), 1)
    s = jnp.where((col <= row)[None, :, :], s, -jnp.inf)

    # Numerically-stable softmax along keys, all in f32 on the VPU/EUP.
    s = s - jnp.max(s, axis=-1, keepdims=True)
    p = jnp.exp(s)
    denom = jnp.sum(p, axis=-1, keepdims=True)
    wei = p * pl.reciprocal(denom, approx=False)   # EUP recip + VPU mul

    out = jnp.einsum('bqk,bkd->bqd', wei.astype(v.dtype), v,
                     preferred_element_type=jnp.float32)     # (B, T, hs)
    o_ref[...] = out.astype(o_ref.dtype)


@jax.jit
def head_forward(x, wq, wk, wv):
    """x: [B, T, C] -> [B, T, head_size] (causal single-head attention)."""
    B, T, C = x.shape
    hs = wq.shape[1]

    # Fold the module's C**-0.5 score scale (n_embd per the spec, intentional)
    # into Wq and fuse the three projections into one (C, 3*hs) weight.
    wqkv = jnp.concatenate([wq * (C ** -0.5), wk, wv], axis=1)

    return pl.pallas_call(
        head_kernel,
        out_shape=jax.ShapeDtypeStruct((B, T, hs), x.dtype),
        grid_spec=pltpu.PrefetchScalarGridSpec(
            num_scalar_prefetch=0,
            grid=(1,),                                   # whole batch per step
            in_specs=[
                pl.BlockSpec((B, T, C), lambda i: (0, 0, 0)),      # x (full)
                pl.BlockSpec((C, 3 * hs), lambda i: (0, 0)),       # fused W_qkv
            ],
            out_specs=pl.BlockSpec((B, T, hs), lambda i: (0, 0, 0)),
        ),
        compiler_params=pltpu.CompilerParams(
            dimension_semantics=("arbitrary",)),
    )(x, wqkv)


if __name__ == "__main__":
    n_embd = 64
    head_size = 16
    block_size = 32
    B, T = 2, 8          # T <= block_size

    key = jax.random.PRNGKey(0)
    kx, kq, kk, kv = jax.random.split(key, 4)

    x = jax.random.normal(kx, (B, T, n_embd), dtype=jnp.float32)

    # Deterministic parameter init (PyTorch Linear default-ish uniform scale),
    # stored as (in_features, out_features).
    bound = 1.0 / (n_embd ** 0.5)
    wq = jax.random.uniform(kq, (n_embd, head_size), jnp.float32, -bound, bound)
    wk = jax.random.uniform(kk, (n_embd, head_size), jnp.float32, -bound, bound)
    wv = jax.random.uniform(kv, (n_embd, head_size), jnp.float32, -bound, bound)

    out = head_forward(x, wq, wk, wv)
    jax.block_until_ready(out)

    # Pure-JAX reference (mirrors the PyTorch forward).
    q = x @ wq
    k = x @ wk
    v = x @ wv
    wei = (q @ jnp.swapaxes(k, -1, -2)) * (n_embd ** -0.5)
    tril = jnp.tril(jnp.ones((T, T), dtype=bool))
    wei = jnp.where(tril, wei, -jnp.inf)
    wei = jax.nn.softmax(wei, axis=-1)
    ref = wei @ v

    assert out.shape == (B, T, head_size)
    assert jnp.allclose(out, ref, atol=1e-5, rtol=1e-5)

    print("KERNEL_OK")
</pallas_src>

<mosaic_0001>
module attributes {stable_mosaic.version = 11 : i64} {
  func.func @head_kernel(%arg0: i32, %arg1: memref<2x8x64xf32, #tpu.memory_space<vmem>>, %arg2: memref<64x48xf32, #tpu.memory_space<vmem>>, %arg3: memref<2x8x16xf32, #tpu.memory_space<vmem>>) attributes {dimension_semantics = [#tpu.dimension_semantics<arbitrary>], iteration_bounds = array<i64: 1>, scalar_prefetch = 0 : i64, scratch_operands = 0 : i64, tpu.core_type = #tpu.core_type<tc>, window_params = [{pipeline_mode = #tpu.pipeline_mode<synchronous>, transform_indices = @transform_0, window_bounds = array<i64: 2, 8, 64>}, {pipeline_mode = #tpu.pipeline_mode<synchronous>, transform_indices = @transform_1, window_bounds = array<i64: 64, 48>}, {pipeline_mode = #tpu.pipeline_mode<synchronous>, transform_indices = @transform_2, window_bounds = array<i64: 2, 8, 16>}]} {
    %c0 = arith.constant 0 : index
    %c0_0 = arith.constant 0 : index
    %c0_1 = arith.constant 0 : index
    %0 = vector.load %arg1[%c0, %c0_0, %c0_1] : memref<2x8x64xf32, #tpu.memory_space<vmem>>, vector<2x8x64xf32>
    %1 = vector.shape_cast %0 : vector<2x8x64xf32> to vector<16x64xf32>
    %c0_2 = arith.constant 0 : index
    %c0_3 = arith.constant 0 : index
    %2 = vector.load %arg2[%c0_2, %c0_3] : memref<64x48xf32, #tpu.memory_space<vmem>>, vector<64x48xf32>
    %cst = arith.constant dense<0.000000e+00> : vector<16x48xf32>
    %3 = tpu.matmul %1, %2, %cst {dimension_numbers = #tpu.dot_dimension_numbers<[1], [0], [0], [1], [0, 0, 1, 1], [], []>} : vector<16x64xf32>, vector<64x48xf32>, vector<16x48xf32> -> vector<16x48xf32>
    %4 = vector.shape_cast %3 : vector<16x48xf32> to vector<2x8x48xf32>
    %5 = vector.extract_strided_slice %4 {offsets = [0, 0, 0], sizes = [2, 8, 16], strides = [1, 1, 1]} : vector<2x8x48xf32> to vector<2x8x16xf32>
    %6 = vector.extract_strided_slice %4 {offsets = [0, 0, 16], sizes = [2, 8, 16], strides = [1, 1, 1]} : vector<2x8x48xf32> to vector<2x8x16xf32>
    %7 = vector.extract_strided_slice %4 {offsets = [0, 0, 32], sizes = [2, 8, 16], strides = [1, 1, 1]} : vector<2x8x48xf32> to vector<2x8x16xf32>
    "tpu.trace_start"() <{level = 10 : i32, message = "bqd,bkd->bqk"}> : () -> ()
    %cst_4 = arith.constant dense<0.000000e+00> : vector<2x8x8xf32>
    %8 = tpu.matmul %5, %6, %cst_4 {dimension_numbers = #tpu.dot_dimension_numbers<[2], [2], [1], [1], [0, 0, 0, 1, 1, 1], [0], [0]>} : vector<2x8x16xf32>, vector<2x8x16xf32>, vector<2x8x8xf32> -> vector<2x8x8xf32>
    "tpu.trace_stop"() : () -> ()
    %9 = tpu.iota {dimensions = array<i32: 0>} : vector<8x8xi32>
    %10 = tpu.iota {dimensions = array<i32: 1>} : vector<8x8xi32>
    %11 = arith.cmpi sle, %10, %9 : vector<8x8xi32>
    %12 = vector.shape_cast %11 : vector<8x8xi1> to vector<1x8x8xi1>
    %cst_5 = arith.constant 0xFF800000 : f32
    %13 = vector.shape_cast %12 : vector<1x8x8xi1> to vector<1x8x8xi1>
    %14 = vector.broadcast %13 : vector<1x8x8xi1> to vector<2x8x8xi1>
    %15 = vector.broadcast %cst_5 : f32 to vector<2x8x8xf32>
    %16 = arith.select %14, %8, %15 : vector<2x8x8xi1>, vector<2x8x8xf32>
    %cst_6 = arith.constant dense<0xFF800000> : vector<2x8xf32>
    %17 = vector.multi_reduction <maximumf>, %16, %cst_6 [2] : vector<2x8x8xf32> to vector<2x8xf32>
    %18 = vector.shape_cast %17 : vector<2x8xf32> to vector<2x8x1xf32>
    %19 = vector.broadcast %18 : vector<2x8x1xf32> to vector<2x8x8xf32>
    %20 = arith.subf %16, %19 : vector<2x8x8xf32>
    %21 = math.exp %20 : vector<2x8x8xf32>
    %cst_7 = arith.constant dense<0.000000e+00> : vector<2x8xf32>
    %22 = vector.multi_reduction <add>, %21, %cst_7 [2] : vector<2x8x8xf32> to vector<2x8xf32>
    %23 = vector.shape_cast %22 : vector<2x8xf32> to vector<2x8x1xf32>
    %24 = tpu.reciprocal %23 : vector<2x8x1xf32> -> vector<2x8x1xf32>
    %25 = vector.broadcast %24 : vector<2x8x1xf32> to vector<2x8x8xf32>
    %26 = arith.mulf %21, %25 : vector<2x8x8xf32>
    "tpu.trace_start"() <{level = 10 : i32, message = "bqk,bkd->bqd"}> : () -> ()
    %cst_8 = arith.constant dense<0.000000e+00> : vector<2x8x16xf32>
    %27 = tpu.matmul %26, %7, %cst_8 {dimension_numbers = #tpu.dot_dimension_numbers<[2], [1], [1], [2], [0, 0, 0, 1, 1, 2], [0], [0]>} : vector<2x8x8xf32>, vector<2x8x16xf32>, vector<2x8x16xf32> -> vector<2x8x16xf32>
    "tpu.trace_stop"() : () -> ()
    %c0_9 = arith.constant 0 : index
    %c0_10 = arith.constant 0 : index
    %c0_11 = arith.constant 0 : index
    %28 = vector.load %arg3[%c0_9, %c0_10, %c0_11] : memref<2x8x16xf32, #tpu.memory_space<vmem>>, vector<2x8x16xf32>
    tpu.vector_store %arg3[%c0_9, %c0_10, %c0_11], %27 {strides = array<i32>} : memref<2x8x16xf32, #tpu.memory_space<vmem>>, vector<2x8x16xf32>,
    return
  }
  func.func @transform_0(%arg0: i32) -> (i32, i32, i32) {
    %c0_i32 = arith.constant 0 : i32
    %c0_i32_0 = arith.constant 0 : i32
    %c0_i32_1 = arith.constant 0 : i32
    %c0_i32_2 = arith.constant 0 : i32
    return %c0_i32, %c0_i32_0, %c0_i32_1 : i32, i32, i32
  }
  func.func @transform_1(%arg0: i32) -> (i32, i32) {
    %c0_i32 = arith.constant 0 : i32
    %c0_i32_0 = arith.constant 0 : i32
    %c0_i32_1 = arith.constant 0 : i32
    return %c0_i32, %c0_i32_0 : i32, i32
  }
  func.func @transform_2(%arg0: i32) -> (i32, i32, i32) {
    %c0_i32 = arith.constant 0 : i32
    %c0_i32_0 = arith.constant 0 : i32
    %c0_i32_1 = arith.constant 0 : i32
    %c0_i32_2 = arith.constant 0 : i32
    return %c0_i32, %c0_i32_0, %c0_i32_1 : i32, i32, i32
  }
}

</mosaic_0001>

<bundles_post_ra>
// kernel: head_forward.1
= control target key start
LH: loop header
LB: loop body
LE: loop exit
PB: predicated region body
PF: predicated region fallthrough
CT: control target
= control target key end

     0   :  { %s349_s0 = inlined_call_operand.vmem [shape: f32[2,8,64], index: 0, kind: input, shape index: {}]   ;;  %s350_s1 = inlined_call_operand.vmem [shape: f32[64,48], index: 1, kind: input, shape index: {}]   ;;  %s351_s2 = inlined_call_operand.hbm [shape: f32[2,8,16], index: 2, kind: output, shape index: {}]  }
   0x1   :  { %v21_v0 = vld [vmem:[%s350_s1 + $0x38] sm:$0xff]  ;;  %v20_v1 = vld [vmem:[%s350_s1 + $0x30] sm:$0xff]  ;;  %v19_v2 = vld [vmem:[%s350_s1 + $0x28] sm:$0xff] }
   0x2   :  { %37 = vmatpush.msra.mxu0 %v21_v0 }
   0x4   :  { %38 = vmatpush.msra.mxu0 %v20_v1 }
   0x5   :  { %7 = vsyncpa [#allocation3], 0  ;;  %v18_v3 = vld [vmem:[%s350_s1 + $0x20] sm:$0xff]  ;;  %v17_v4 = vld [vmem:[%s350_s1 + $0x18] sm:$0xff]  ;;  %vm22_vm0 = vcmask 523264   ;;  %s284_s29 = smov 112   ;;  %v107_v15 = vlaneseq }
   0x6   :  { %39 = vmatpush.msra.mxu0 %v19_v2  ;;  %v16_v5 = vld [vmem:[%s350_s1 + $0x10] sm:$0xff]  ;;  %v15_v6 = vld [vmem:[%s350_s1 + $0x8] sm:$0xff]  ;;  %v14_v7 = vld [vmem:[%s350_s1] sm:$0xff]  ;;  %s285_s30 = smov 96   ;;  %vm55_vm1 = vcmask 130048   ;;  %vm116_vm3 = vcmask 64512  }
   0x7   :  { %v12_v8 = vld [vmem:[%s349_s0] sm:$0xff]  ;;  %v13_v9 = vld [vmem:[%s349_s0 + $0x8] sm:$0xff]  ;;  %v108_v16 = vshrl.u32 %v107_v15, 7  ;;  %v110_v17 = vand.u32 127, %v107_v15  ;;  %s286_s0 = smov [#allocation2]   ;;  %s225_s5 = sshll.u32 %s351_s2, 4  ;;  %s226_s5 = int_to_ptr.hbm [resolvable:$true] %s225_s5 }
   0x8   :  { %40 = vmatpush.msra.mxu0 %v18_v3  ;;  %s223_s1 = sshll.u32 %s286_s0, 4  ;;  %s287_s6 = smov 128   ;;  %s224_s1 = int_to_ptr.vmem [resolvable:$true] %s223_s1 }
   0x9   :  { %vm111_vm2 = vcmp.le.s32.totalorder %v110_v17, %v108_v16  ;;  %s288_s7 = smov 8  }
   0xa   :  { %41 = vmatpush.msra.mxu0 %v17_v4 }
   0xc   :  { %42 = vmatpush.msra.mxu0 %v16_v5 }
   0xe   :  { %43 = vmatpush.msra.mxu0 %v15_v6 }
  0x10   :  { %44 = vmatpush.msra.mxu0 %v14_v7 }
  0x11   :  { %237 = vmatmul.msk.f32.vlgmr.msra.gmra.mxu0 %vm22_vm0, %v12_v8 }
  0x19   :  { %238 = vmatmul.msk.f32.gmra.mxu0 %vm22_vm0, %v13_v9 }
  0x8e   :  { %v46_v10 = vpop.f32.mrf.mxu0 }
  0x8f   :  { %53 = vrot.lane.b32.xlu0 %v46_v10, %s284_s29 }
  0x96   :  { %v49_v11 = vpop.f32.mrf.mxu0 }
  0x97   :  { %81 = vrot.lane.b32.xlu0 %v49_v11, %s284_s29 }
  0x9f   :  { %165 = vrot.lane.b32.xlu0 %v46_v10, %s285_s30 }
 0x101   :  { %v54_v12 = vpop.permute.xlu0 %53 }
 0x102   :  { %239 = vmatpush.xpose.msk.msra.mxu1 %vm55_vm1, %v54_v12 }
 0x105   :  { %240 = vmatmul.msk.f32.vlgmr.msra.gmra.mxu1 %vm55_vm1, %v46_v10 }
 0x109   :  { %v82_v13 = vpop.permute.xlu0 %81 }
 0x10a   :  { %241 = vmatpush.xpose.msk.msra.mxu2 %vm55_vm1, %v82_v13 }
 0x10d   :  { %242 = vmatmul.msk.f32.vlgmr.msra.gmra.mxu2 %vm55_vm1, %v49_v11 }
 0x111   :  { %v166_v14 = vpop.permute.xlu0 %165 }
 0x112   :  { %186 = vmatpush.msra.mxu3 %v166_v14 }
 0x182   :  { %v77_v18 = vpop.f32.mrf.mxu1 }
 0x183   :  { %v114_v19 = vsel %vm111_vm2, %v77_v18, -inf }
 0x184   :  { %v117_v20 = vsel %vm116_vm3, %v114_v19, -inf }
 0x185   :  { %118 = vmax.xlane.f32.xlu1 %v117_v20 }
 0x190   :  { %v104_v21 = vpop.f32.mrf.mxu2 }
 0x191   :  { %v115_v22 = vsel %vm111_vm2, %v104_v21, -inf }
 0x192   :  { %v120_v23 = vsel %vm116_vm3, %v115_v22, -inf }
 0x193   :  { %121 = vmax.xlane.f32.xlu1 %v120_v23 }
 0x1ac   :  { %191 = vrot.lane.b32.xlu1 %v49_v11, %s285_s30 }
 0x1f8   :  { %v119_v24 = vpop.xlane.xlu1 %118 }
 0x1f9   :  { %v123_v25 = vsub.f32 %v114_v19, %v119_v24 }
 0x1fb   :  { %v125_v26 = vmul.f32 1.442695, %v123_v25 }
 0x1fd   :  { %250 = vpow2.f32 %v125_v26 }
 0x203   :  { %v251_v27 = vpop.eup %250 }
 0x204   :  { %v129_v28 = vsel %vm116_vm3, %v251_v27, 0.0 }
 0x205   :  { %130 = vadd.xlane.f32.xlu2 %v129_v28 }
 0x206   :  { %v122_v29 = vpop.xlane.xlu1 %121 }
 0x207   :  { %v124_v30 = vsub.f32 %v115_v22, %v122_v29 }
 0x209   :  { %v127_v31 = vmul.f32 1.442695, %v124_v30 }
 0x20b   :  { %252 = vpow2.f32 %v127_v31 }
 0x211   :  { %v253_v32 = vpop.eup %252 }
 0x212   :  { %v132_v33 = vsel %vm116_vm3, %v253_v32, 0.0 }
 0x213   :  { %133 = vadd.xlane.f32.xlu2 %v132_v33 }
 0x21e   :  { %v192_v34 = vpop.permute.xlu1 %191 }
 0x21f   :  { %212 = vmatpush.msrb.mxu3 %v192_v34 }
 0x278   :  { %v131_v35 = vpop.xlane.xlu2 %130 }
 0x279   :  { %254 = vrcp.f32 %v131_v35  ;;  %v146_v39 = vand.u32 2147483648, %v131_v35  ;;  %v144_v41 = vand.u32 2147483647, %v131_v35  ;;  %vm140_vm5 = vweird.f32 %v131_v35 }
 0x27b   :  { %v147_v44 = vor.u32 1.1754944e-38, %v146_v39  ;;  %vm145_vm7 = vcmp.eq.f32.partialorder %v144_v41, 8.507059e+37 }
 0x27f   :  { %v255_v36 = vpop.eup %254 }
 0x280   :  { %v136_v37 = vmul.f32 %v255_v36, %v131_v35  ;;  %vm141_vm4 = vweird.f32 %v255_v36 }
 0x281   :  { %vm142_vm6 = vmor %vm140_vm5, %vm141_vm4 }
 0x282   :  { %v137_v38 = vsub.f32 1.0, %v136_v37 }
 0x284   :  { %v138_v40 = vmul.f32 %v255_v36, %v137_v38 }
 0x286   :  { %v134_v42 = vpop.xlane.xlu2 %133  ;;  %v139_v43 = vadd.f32 %v255_v36, %v138_v40 }
 0x287   :  { %256 = vrcp.f32 %v134_v42  ;;  %v160_v51 = vand.u32 2147483648, %v134_v42  ;;  %v158_v53 = vand.u32 2147483647, %v134_v42  ;;  %vm154_vm9 = vweird.f32 %v134_v42 }
 0x288   :  { %v143_v45 = vsel %vm142_vm6, %v255_v36, %v139_v43 }
 0x289   :  { %v148_v46 = vsel %vm145_vm7, %v147_v44, %v143_v45  ;;  %v161_v55 = vor.u32 1.1754944e-38, %v160_v51  ;;  %vm159_vm11 = vcmp.eq.f32.partialorder %v158_v53, 8.507059e+37 }
 0x28a   :  { %v163_v47 = vmul.f32 %v251_v27, %v148_v46 }
 0x28c   :  { %243 = vmatmul.msk.f32.vlgmr.msra.gmra.mxu3 %vm116_vm3, %v163_v47 }
 0x28d   :  { %v257_v48 = vpop.eup %256 }
 0x28e   :  { %v150_v49 = vmul.f32 %v257_v48, %v134_v42  ;;  %vm155_vm8 = vweird.f32 %v257_v48 }
 0x28f   :  { %vm156_vm10 = vmor %vm154_vm9, %vm155_vm8 }
 0x290   :  { %v151_v50 = vsub.f32 1.0, %v150_v49 }
 0x292   :  { %v152_v52 = vmul.f32 %v257_v48, %v151_v50 }
 0x294   :  { %v153_v54 = vadd.f32 %v257_v48, %v152_v52 }
 0x296   :  { %v157_v56 = vsel %vm156_vm10, %v257_v48, %v153_v54 }
 0x297   :  { %v162_v57 = vsel %vm159_vm11, %v161_v55, %v157_v56 }
 0x298   :  { %v164_v58 = vmul.f32 %v253_v32, %v162_v57 }
 0x29a   :  { %244 = vmatmul.msk.f32.vlgmr.msrb.gmra.mxu3 %vm116_vm3, %v164_v58 }
 0x30f   :  { %v188_v59 = vpop.f32.mrf.mxu3 }
 0x310   :  { %217 = vst.msk [vmem:[#allocation2] sm:$0xff] %vm55_vm1, %v188_v59 }
 0x31d   :  { %v214_v60 = vpop.f32.mrf.mxu3 }
 0x31e   :  { %218 = vst.msk [vmem:[#allocation2 + $0x8] sm:$0xff] %vm55_vm1, %v214_v60 }
 0x31f   :  { %231 = dma.vmem_to_hbm [thread:$0]  %s224_s1, 256, %s226_s5, [#allocation3], %s287_s6, %s287_s6, %s288_s7  }
 0x320   :  { %282 = dma.done.wait [#allocation3], 256  }
 0x321   :  { %283 = vsyncadd [#allocation3], 4294967040 }
 0x322   :  { %236 = vsyncpa [#allocation3], 1 }

</bundles_post_ra>
